<compile_context>
chip_gen: v7x
topology: tpu7x:2x2x1
jax: 0.10.0
libtpu: 0.0.40
codegen_flags: <defaults>
</compile_context>

<pallas_src>
import jax
import jax.numpy as jnp
from jax.experimental import pallas as pl
from jax.experimental.pallas import tpu as pltpu


def _mf_kernel(uid_ref, iid_ref, uembT_ref, iembT_ref, wu_ref, wi_ref, b_ref,
               o_ref):
    tb = uid_ref.shape[-1]
    n_users = uembT_ref.shape[-1]
    n_items = iembT_ref.shape[-1]

    uid = uid_ref[0]                                    # (1, TB) int32
    iid = iid_ref[0]                                    # (1, TB) int32

    # Fold the Linear(2D->1) weight into the tables:
    #   su[0, u] = sum_d wu[d] * user_emb[u, d]   (user contribution per row)
    #   si[0, i] = sum_d wi[d] * item_emb[i, d]   (item contribution per row)
    # VPU multiply + sublane (XLU) reduce over the VMEM-resident tables; exact
    # f32, grid-invariant (recompute per step is negligible at these sizes).
    su = jnp.sum(wu_ref[...] * uembT_ref[...], axis=0, keepdims=True)  # (1, U)
    si = jnp.sum(wi_ref[...] * iembT_ref[...], axis=0, keepdims=True)  # (1, I)

    # In-VMEM row gather as a one-hot MXU matmul; the batch stays on the lane
    # axis so every downstream op (and the output store) is lane-dense.
    oh_u = (jax.lax.broadcasted_iota(jnp.int32, (n_users, tb), 0)
            == uid).astype(jnp.float32)                 # (U, TB)
    oh_i = (jax.lax.broadcasted_iota(jnp.int32, (n_items, tb), 0)
            == iid).astype(jnp.float32)                 # (I, TB)

    logit = (jnp.dot(su, oh_u, preferred_element_type=jnp.float32)
             + jnp.dot(si, oh_i, preferred_element_type=jnp.float32)
             + b_ref[0, 0])                             # (1, TB)
    o_ref[0] = jax.nn.sigmoid(logit).astype(o_ref.dtype)


def mf_forward(user_id, item_id, user_emb, item_emb, w, b, *, tb=512):
    """Pallas MFNet forward.  Returns sigmoid scores of shape [B]."""
    B = user_id.shape[0]
    D = user_emb.shape[1]
    U = user_emb.shape[0]
    I = item_emb.shape[0]

    # Lane-dense batch tile: a multiple of 128, no larger than the padded batch.
    tb = max(128, min(int(tb), pl.cdiv(B, 128) * 128))
    num_tiles = pl.cdiv(B, tb)
    b_pad = num_tiles * tb

    # Pad the batch to a whole number of tiles (pad ids index row 0; padded
    # outputs are dropped below).
    uid = jnp.pad(user_id.astype(jnp.int32), (0, b_pad - B)).reshape(
        num_tiles, 1, tb)
    iid = jnp.pad(item_id.astype(jnp.int32), (0, b_pad - B)).reshape(
        num_tiles, 1, tb)

    # Free layout plumbing in the wrapper: tables transposed so the latent dim
    # sits on sublanes / rows on lanes; linear weight split into its two halves.
    uembT = user_emb.astype(jnp.float32).T              # (D, U)
    iembT = item_emb.astype(jnp.float32).T              # (D, I)
    w_flat = w.reshape(-1).astype(jnp.float32)          # (2D,)
    wu = w_flat[:D].reshape(D, 1)                       # user half
    wi = w_flat[D:].reshape(D, 1)                       # item half
    bias = b.reshape(1, 1).astype(jnp.float32)

    out = pl.pallas_call(
        _mf_kernel,
        out_shape=jax.ShapeDtypeStruct((num_tiles, 1, tb), jnp.float32),
        grid_spec=pltpu.PrefetchScalarGridSpec(
            num_scalar_prefetch=0,
            grid=(num_tiles,),
            in_specs=[
                pl.BlockSpec((1, 1, tb), lambda i: (i, 0, 0)),   # user-id tile
                pl.BlockSpec((1, 1, tb), lambda i: (i, 0, 0)),   # item-id tile
                pl.BlockSpec((D, U), lambda i: (0, 0)),          # user table^T (VMEM resident)
                pl.BlockSpec((D, I), lambda i: (0, 0)),          # item table^T (VMEM resident)
                pl.BlockSpec((D, 1), lambda i: (0, 0)),          # weight, user half
                pl.BlockSpec((D, 1), lambda i: (0, 0)),          # weight, item half
                pl.BlockSpec(memory_space=pltpu.MemorySpace.SMEM),  # bias scalar
            ],
            out_specs=pl.BlockSpec((1, 1, tb), lambda i: (i, 0, 0)),
        ),
        compiler_params=pltpu.CompilerParams(
            dimension_semantics=("parallel",)),
    )(uid, iid, uembT, iembT, wu, wi, bias)

    # Drop batch padding and apply torch.squeeze(..., dim=-1).
    return out.reshape(-1)[:B]


def mf_ref(user_id, item_id, user_emb, item_emb, w, b):
    """Pure-JAX reference of the PyTorch forward."""
    u = user_emb[user_id]                               # [B, D]
    it = item_emb[item_id]                              # [B, D]
    x = jnp.concatenate([u, it], axis=-1)               # [B, 2D]
    logits = jnp.sum(x * w[0], axis=-1) + b[0, 0]       # [B]
    return jax.nn.sigmoid(logits)


if __name__ == "__main__":
    # Small, deterministic configuration consistent with MFNet.__init__.
    user_num, item_num, latent_dim, batch = 12, 24, 16, 8

    key = jax.random.PRNGKey(0)
    k_ue, k_ie, k_w, k_b, k_u, k_i = jax.random.split(key, 6)

    # nn.Embedding default init: N(0, 1)
    user_emb = jax.random.normal(k_ue, (user_num, latent_dim), dtype=jnp.float32)
    item_emb = jax.random.normal(k_ie, (item_num, latent_dim), dtype=jnp.float32)

    # nn.Linear(2D, 1) default init: U(-1/sqrt(2D), 1/sqrt(2D))
    bound = 1.0 / jnp.sqrt(2.0 * latent_dim)
    w = jax.random.uniform(k_w, (1, 2 * latent_dim), dtype=jnp.float32,
                           minval=-bound, maxval=bound)
    b = jax.random.uniform(k_b, (1, 1), dtype=jnp.float32,
                           minval=-bound, maxval=bound)

    user_id = jax.random.randint(k_u, (batch,), 0, user_num, dtype=jnp.int32)
    item_id = jax.random.randint(k_i, (batch,), 0, item_num, dtype=jnp.int32)

    out = mf_forward(user_id, item_id, user_emb, item_emb, w, b)
    out = jax.block_until_ready(out)

    ref = mf_ref(user_id, item_id, user_emb, item_emb, w, b)
    assert out.shape == (batch,)
    assert jnp.allclose(out, ref, atol=1e-5, rtol=1e-5), (out, ref)

    # TODO(synk): item_similarity / item_sim_sample / _loss_ours use host-side
    # sampling (np.random.choice, torch.multinomial) and training-time loss math;
    # they are not part of forward() and are not kernelized here.
    print("KERNEL_OK")
</pallas_src>

<mosaic_0001>
module attributes {stable_mosaic.version = 11 : i64} {
  func.func @_mf_kernel(%arg0: i32, %arg1: memref<1x1x128xi32, #tpu.memory_space<vmem>>, %arg2: memref<1x1x128xi32, #tpu.memory_space<vmem>>, %arg3: memref<16x12xf32, #tpu.memory_space<vmem>>, %arg4: memref<16x24xf32, #tpu.memory_space<vmem>>, %arg5: memref<16x1xf32, #tpu.memory_space<vmem>>, %arg6: memref<16x1xf32, #tpu.memory_space<vmem>>, %arg7: memref<1x1xf32, #tpu.memory_space<smem>>, %arg8: memref<1x1x128xf32, #tpu.memory_space<vmem>>) attributes {dimension_semantics = [#tpu.dimension_semantics<parallel>], iteration_bounds = array<i64: 1>, scalar_prefetch = 0 : i64, scratch_operands = 0 : i64, tpu.core_type = #tpu.core_type<tc>, window_params = [{transform_indices = @transform_0, window_bounds = array<i64: 1, 1, 128>}, {transform_indices = @transform_1, window_bounds = array<i64: 1, 1, 128>}, {pipeline_mode = #tpu.pipeline_mode<synchronous>, transform_indices = @transform_2, window_bounds = array<i64: 16, 12>}, {pipeline_mode = #tpu.pipeline_mode<synchronous>, transform_indices = @transform_3, window_bounds = array<i64: 16, 24>}, {pipeline_mode = #tpu.pipeline_mode<synchronous>, transform_indices = @transform_4, window_bounds = array<i64: 16, 1>}, {pipeline_mode = #tpu.pipeline_mode<synchronous>, transform_indices = @transform_5, window_bounds = array<i64: 16, 1>}, {transform_indices = @transform_6, window_bounds = array<i64: 1, 1>}, {transform_indices = @transform_7, window_bounds = array<i64: 1, 1, 128>}]} {
    %c0 = arith.constant 0 : index
    %c0_0 = arith.constant 0 : index
    %c0_1 = arith.constant 0 : index
    %0 = vector.load %arg1[%c0, %c0_0, %c0_1] : memref<1x1x128xi32, #tpu.memory_space<vmem>>, vector<1x1x128xi32>
    %1 = vector.shape_cast %0 : vector<1x1x128xi32> to vector<1x128xi32>
    %c0_2 = arith.constant 0 : index
    %c0_3 = arith.constant 0 : index
    %c0_4 = arith.constant 0 : index
    %2 = vector.load %arg2[%c0_2, %c0_3, %c0_4] : memref<1x1x128xi32, #tpu.memory_space<vmem>>, vector<1x1x128xi32>
    %3 = vector.shape_cast %2 : vector<1x1x128xi32> to vector<1x128xi32>
    %c0_5 = arith.constant 0 : index
    %c0_6 = arith.constant 0 : index
    %4 = vector.load %arg5[%c0_5, %c0_6] : memref<16x1xf32, #tpu.memory_space<vmem>>, vector<16x1xf32>
    %c0_7 = arith.constant 0 : index
    %c0_8 = arith.constant 0 : index
    %5 = vector.load %arg3[%c0_7, %c0_8] : memref<16x12xf32, #tpu.memory_space<vmem>>, vector<16x12xf32>
    %6 = vector.broadcast %4 : vector<16x1xf32> to vector<16x12xf32>
    %7 = arith.mulf %6, %5 : vector<16x12xf32>
    %cst = arith.constant dense<0.000000e+00> : vector<12xf32>
    %8 = vector.multi_reduction <add>, %7, %cst [0] : vector<16x12xf32> to vector<12xf32>
    %9 = vector.shape_cast %8 : vector<12xf32> to vector<1x12xf32>
    %c0_9 = arith.constant 0 : index
    %c0_10 = arith.constant 0 : index
    %10 = vector.load %arg6[%c0_9, %c0_10] : memref<16x1xf32, #tpu.memory_space<vmem>>, vector<16x1xf32>
    %c0_11 = arith.constant 0 : index
    %c0_12 = arith.constant 0 : index
    %11 = vector.load %arg4[%c0_11, %c0_12] : memref<16x24xf32, #tpu.memory_space<vmem>>, vector<16x24xf32>
    %12 = vector.broadcast %10 : vector<16x1xf32> to vector<16x24xf32>
    %13 = arith.mulf %12, %11 : vector<16x24xf32>
    %cst_13 = arith.constant dense<0.000000e+00> : vector<24xf32>
    %14 = vector.multi_reduction <add>, %13, %cst_13 [0] : vector<16x24xf32> to vector<24xf32>
    %15 = vector.shape_cast %14 : vector<24xf32> to vector<1x24xf32>
    %16 = tpu.iota {dimensions = array<i32: 0>} : vector<12x128xi32>
    %17 = vector.broadcast %1 : vector<1x128xi32> to vector<12x128xi32>
    %18 = arith.cmpi eq, %16, %17 : vector<12x128xi32>
    %19 = arith.extui %18 : vector<12x128xi1> to vector<12x128xi32>
    %20 = arith.sitofp %19 : vector<12x128xi32> to vector<12x128xf32>
    %21 = tpu.iota {dimensions = array<i32: 0>} : vector<24x128xi32>
    %22 = vector.broadcast %3 : vector<1x128xi32> to vector<24x128xi32>
    %23 = arith.cmpi eq, %21, %22 : vector<24x128xi32>
    %24 = arith.extui %23 : vector<24x128xi1> to vector<24x128xi32>
    %25 = arith.sitofp %24 : vector<24x128xi32> to vector<24x128xf32>
    %cst_14 = arith.constant dense<0.000000e+00> : vector<1x128xf32>
    %26 = tpu.matmul %9, %20, %cst_14 {dimension_numbers = #tpu.dot_dimension_numbers<[1], [0], [0], [1], [0, 0, 1, 1], [], []>} : vector<1x12xf32>, vector<12x128xf32>, vector<1x128xf32> -> vector<1x128xf32>
    %cst_15 = arith.constant dense<0.000000e+00> : vector<1x128xf32>
    %27 = tpu.matmul %15, %25, %cst_15 {dimension_numbers = #tpu.dot_dimension_numbers<[1], [0], [0], [1], [0, 0, 1, 1], [], []>} : vector<1x24xf32>, vector<24x128xf32>, vector<1x128xf32> -> vector<1x128xf32>
    %28 = arith.addf %26, %27 : vector<1x128xf32>
    %c0_16 = arith.constant 0 : index
    %c0_17 = arith.constant 0 : index
    %29 = memref.load %arg7[%c0_16, %c0_17] : memref<1x1xf32, #tpu.memory_space<smem>>
    %30 = vector.broadcast %29 : f32 to vector<1x128xf32>
    %31 = arith.addf %28, %30 : vector<1x128xf32>
    %32 = arith.negf %31 : vector<1x128xf32>
    %33 = math.exp %32 : vector<1x128xf32>
    %cst_18 = arith.constant 1.000000e+00 : f32
    %34 = vector.broadcast %cst_18 : f32 to vector<1x128xf32>
    %35 = arith.addf %34, %33 : vector<1x128xf32>
    %36 = arith.divf %34, %35 : vector<1x128xf32>
    %c0_19 = arith.constant 0 : index
    %c0_20 = arith.constant 0 : index
    %c0_21 = arith.constant 0 : index
    %37 = vector.load %arg8[%c0_19, %c0_20, %c0_21] : memref<1x1x128xf32, #tpu.memory_space<vmem>>, vector<1x1x128xf32>
    %38 = vector.shape_cast %37 : vector<1x1x128xf32> to vector<1x128xf32>
    %39 = vector.shape_cast %36 : vector<1x128xf32> to vector<1x1x128xf32>
    tpu.vector_store %arg8[%c0_19, %c0_20, %c0_21], %39 {strides = array<i32>} : memref<1x1x128xf32, #tpu.memory_space<vmem>>, vector<1x1x128xf32>,
    return
  }
  func.func @transform_0(%arg0: i32) -> (i32, i32, i32) {
    %c0_i32 = arith.constant 0 : i32
    %c0_i32_0 = arith.constant 0 : i32
    %c0_i32_1 = arith.constant 0 : i32
    return %arg0, %c0_i32, %c0_i32_0 : i32, i32, i32
  }
  func.func @transform_1(%arg0: i32) -> (i32, i32, i32) {
    %c0_i32 = arith.constant 0 : i32
    %c0_i32_0 = arith.constant 0 : i32
    %c0_i32_1 = arith.constant 0 : i32
    return %arg0, %c0_i32, %c0_i32_0 : i32, i32, i32
  }
  func.func @transform_2(%arg0: i32) -> (i32, i32) {
    %c0_i32 = arith.constant 0 : i32
    %c0_i32_0 = arith.constant 0 : i32
    %c0_i32_1 = arith.constant 0 : i32
    return %c0_i32, %c0_i32_0 : i32, i32
  }
  func.func @transform_3(%arg0: i32) -> (i32, i32) {
    %c0_i32 = arith.constant 0 : i32
    %c0_i32_0 = arith.constant 0 : i32
    %c0_i32_1 = arith.constant 0 : i32
    return %c0_i32, %c0_i32_0 : i32, i32
  }
  func.func @transform_4(%arg0: i32) -> (i32, i32) {
    %c0_i32 = arith.constant 0 : i32
    %c0_i32_0 = arith.constant 0 : i32
    %c0_i32_1 = arith.constant 0 : i32
    return %c0_i32, %c0_i32_0 : i32, i32
  }
  func.func @transform_5(%arg0: i32) -> (i32, i32) {
    %c0_i32 = arith.constant 0 : i32
    %c0_i32_0 = arith.constant 0 : i32
    %c0_i32_1 = arith.constant 0 : i32
    return %c0_i32, %c0_i32_0 : i32, i32
  }
  func.func @transform_6(%arg0: i32) -> (i32, i32) {
    %c0_i32 = arith.constant 0 : i32
    %c0_i32_0 = arith.constant 0 : i32
    %c0_i32_1 = arith.constant 0 : i32
    return %c0_i32, %c0_i32_0 : i32, i32
  }
  func.func @transform_7(%arg0: i32) -> (i32, i32, i32) {
    %c0_i32 = arith.constant 0 : i32
    %c0_i32_0 = arith.constant 0 : i32
    %c0_i32_1 = arith.constant 0 : i32
    return %arg0, %c0_i32, %c0_i32_0 : i32, i32, i32
  }
}

</mosaic_0001>

<bundles_post_ra>
// kernel: tpu_custom_call.1
= control target key start
LH: loop header
LB: loop body
LE: loop exit
PB: predicated region body
PF: predicated region fallthrough
CT: control target
= control target key end

     0   :  { %v365_v2 = vmov 0   ;;  %s463_s0 = inlined_call_operand.vmem [shape: s32[1,1,128], index: 0, kind: input, shape index: {}]   ;;  %s464_s1 = inlined_call_operand.vmem [shape: s32[1,1,128], index: 1, kind: input, shape index: {}]   ;;  %s465_s2 = inlined_call_operand.vmem [shape: f32[16,12], index: 2, kind: input, shape index: {}]   ;;  %s466_s3 = inlined_call_operand.vmem [shape: f32[16,24], index: 3, kind: input, shape index: {}]   ;;  %s467_s4 = inlined_call_operand.vmem [shape: f32[16,1], index: 4, kind: input, shape index: {}]   ;;  %s468_s5 = inlined_call_operand.vmem [shape: f32[16,1], index: 5, kind: input, shape index: {}]   ;;  %s469_s6 = inlined_call_operand.<no memory space> [shape: f32[1,1], index: 6, kind: input, shape index: {}]   ;;  %s470_s7 = inlined_call_operand.hbm [shape: f32[1,1,128], index: 7, kind: output, shape index: {}]  }
   0x1   :  { %v56_v0 = vld [vmem:[%s468_s5] sm:$0xff]  ;;  %336 = vset.pattern.permute.xlu1 %v365_v2  ;;  %335 = vset.pattern.permute.xlu0 %v365_v2 }
   0x2   :  { %v30_v1 = vld [vmem:[%s467_s4] sm:$0xff]  ;;  %62 = vperm.xlu1 %336, %v56_v0  }
   0x3   :  { %36 = vperm.xlu0 %335, %v30_v1  }
   0x4   :  { %13 = vsyncpa [#allocation4], 0  ;;  %v57_v3 = vld [vmem:[%s468_s5 + $0x8] sm:$0xff]  ;;  %v82_v5 = vlaneseq  ;;  %v286_v8 = vld [vmem:[%s464_s1] ss:$0 sm:$0xff]  ;;  %v366_v10 = vmov 0.0|0.0   ;;  %v260_v49 = vstv %s469_s6 }
   0x5   :  { %v31_v4 = vld [vmem:[%s467_s4 + $0x8] sm:$0xff]  ;;  %v283_v9 = vld [vmem:[%s463_s0] ss:$0 sm:$0xff]  ;;  %321 = vmatprep.subr.bf16.mxu0 %v366_v10  ;;  %324 = vmatprep.subr.bf16.mxu1 %v366_v10  ;;  %v367_v11 = vmov 1.0|1.0   ;;  %v368_v12 = vmov 0.0  }
   0x6   :  { %67 = vperm.xlu1 %336, %v57_v3   ;;  %v83_v6 = vshrl.u32 %v82_v5, 7  ;;  %vm185_vm5 = vcmask 1043456   ;;  %v369_v15 = vmov 1.0   ;;  %vm370_vm7 = vmmov 0   ;;  %v58_v17 = vld [vmem:[%s466_s3] sm:$0xff]  ;;  %v59_v21 = vld [vmem:[%s466_s3 + $0x8] sm:$0xff] }
   0x7   :  { %41 = vperm.xlu0 %335, %v31_v4   ;;  %311 = vmatprep.mubr.msk.f32.mxu0 %vm370_vm7, %v368_v12  ;;  %v32_v19 = vld [vmem:[%s465_s2] sm:$0xff]  ;;  %v33_v22 = vld [vmem:[%s465_s2 + $0x8] sm:$0xff]  ;;  %vm72_vm9 = vcmask 195584   ;;  %vm46_vm10 = vcmask 97280   ;;  %s371_s17 = smov [#allocation3]  }
   0x8   :  { %v84_v7 = vadd.s32 8, %v83_v6  ;;  %vm100_vm0 = vcmp.eq.s32.totalorder %v83_v6, %v286_v8  ;;  %vm89_vm4 = vcmp.eq.s32.totalorder %v83_v6, %v283_v9  ;;  %v95_v14 = vadd.s32 16, %v83_v6  ;;  %318 = vmatprep.mubr.msk.f32.mxu1 %vm370_vm7, %v368_v12  ;;  %s275_s18 = sshll.u32 %s371_s17, 4  ;;  %s276_s18 = int_to_ptr.vmem [resolvable:$true] %s275_s18 }
   0x9   :  { %vm326_vm6 = vmpackc.low %vm185_vm5, %vm89_vm4  ;;  %s341_s19 = scalar_lea.vmem %s276_s18, 16  ;;  %s345_s20 = scalar_lea.vmem %s276_s18, 32 }
   0xa   :  { %vm101_vm1 = vcmp.eq.s32.totalorder %v84_v7, %v286_v8  ;;  %vm90_vm2 = vcmp.eq.s32.totalorder %v84_v7, %v283_v9  ;;  %vm102_vm8 = vcmp.eq.s32.totalorder %v95_v14, %v286_v8  ;;  %p342_p0 = scmp.ne.s32.totalorder %s276_s18, %s341_s19  ;;  %p346_p1 = scmp.lt.s32.totalorder %s276_s18, %s276_s18 }
   0xb   :  { %vm322_vm3 = vmpackc.low %vm101_vm1, %vm100_vm0  ;;  %v285_v13 = vsel %vm90_vm2, 1.0, %v368_v12  ;;  %p347_p2 = scmp.lt.s32.totalorder %s345_s20, %s341_s19 }
   0xc   :  { %323 = vmatpush3.bf16.msk.msra.mxu0 %vm322_vm3, %v367_v11  ;;  %v325_v16 = vpack.c.bf16 %v285_v13, %v369_v15 }
   0xd   :  { %309 = vmatprep.subr.mxu0 %v368_v12  ;;  %p348_p3 = por %p347_p2, %p346_p1 }
   0xe   :  { %327 = vmatpush3.bf16.msk.msra.mxu1 %vm326_vm6, %v325_v16 }
   0xf   :  { %p349_p4 = pnand %p348_p3, %p342_p0 }
  0x10   :  { %310 = vmatpush3.msk.msra.mxu0 %vm102_vm8, %v369_v15 }
  0x81   :  { %v63_v18 = vpop.permute.xlu1 %62 }
  0x82   :  { %v37_v20 = vpop.permute.xlu0 %36  ;;  %v70_v23 = vmul.f32 %v63_v18, %v58_v17 }
  0x83   :  { %v44_v24 = vmul.f32 %v37_v20, %v32_v19 }
  0x84   :  { %v73_v29 = vsel %vm72_vm9, %v70_v23, 0.0 }
  0x85   :  { %v68_v25 = vpop.permute.xlu1 %67  ;;  %v47_v30 = vsel %vm46_vm10, %v44_v24, 0.0 }
  0x86   :  { %v42_v26 = vpop.permute.xlu0 %41  ;;  %v71_v27 = vmul.f32 %v68_v25, %v59_v21 }
  0x87   :  { %v45_v28 = vmul.f32 %v42_v26, %v33_v22 }
  0x88   :  { %v74_v31 = vsel %vm72_vm9, %v71_v27, 0.0 }
  0x89   :  { %v48_v32 = vsel %vm46_vm10, %v45_v28, 0.0  ;;  %v75_v33 = vadd.f32 %v74_v31, %v73_v29 }
  0x8a   :  { %v49_v34 = vadd.f32 %v48_v32, %v47_v30 }
  0x8b   :  { %v76_v35 = vrot.slane %v75_v33, 4 }
  0x8c   :  { %v50_v36 = vrot.slane %v49_v34, 4 }
  0x8d   :  { %v77_v37 = vadd.f32 %v76_v35, %v75_v33 }
  0x8e   :  { %v51_v38 = vadd.f32 %v50_v36, %v49_v34 }
  0x8f   :  { %v78_v39 = vrot.slane %v77_v37, 2 }
  0x90   :  { %v52_v40 = vrot.slane %v51_v38, 2 }
  0x91   :  { %v79_v41 = vadd.f32 %v78_v39, %v77_v37 }
  0x92   :  { %v53_v42 = vadd.f32 %v52_v40, %v51_v38 }
  0x93   :  { %v80_v43 = vrot.slane %v79_v41, 1 }
  0x94   :  { %v54_v44 = vrot.slane %v53_v42, 1 }
  0x95   :  { %v81_v45 = vadd.f32 %v80_v43, %v79_v41 }
  0x96   :  { %v55_v46 = vadd.f32 %v54_v44, %v53_v42 }
  0x97   :  { %312 = vmatmul.mubr.msk.f32.vlgmr.msra.gmra.mrb[0].mxu0 %vm72_vm9, %v81_v45 }
  0x98   :  { %319 = vmatmul.mubr.msk.f32.vlgmr.msra.gmra.mrb[0].mxu1 %vm46_vm10, %v55_v46 }
 0x16a   :  { %v178_v47 = vpop.f32.mrb[0].mxu0 }
 0x16b   :  { %v255_v48 = vpop.f32.mrb[0].mxu1  ;;  %v313_v51 = vpop.f32.mrb[1].mxu0 }
 0x16c   :  { %v256_v50 = vadd.f32 %v255_v48, %v178_v47  ;;  %v320_v52 = vpop.f32.mrb[1].mxu1 }
 0x16e   :  { %v261_v53 = vadd.f32 %v260_v49, %v256_v50 }
 0x170   :  { %v297_v54 = vmul.f32 -1.442695, %v261_v53 }
 0x172   :  { %337 = vpow2.f32 %v297_v54 }
 0x17c   :  { %v338_v55 = vpop.eup %337 }
 0x17d   :  { %v265_v56 = vadd.f32 1.0, %v338_v55 }
 0x17f   :  { %339 = vrcp.f32 %v265_v56 }
 0x189   :  { %v340_v57 = vpop.eup %339 }
 0x18a   :  { %268 = vst [vmem:[#allocation3] sm:$0x1] %v340_v57 }
 0x18b   :  { %352 = shalt.err (!%p349_p4)
}
 0x18c   :  { %s353_s22 = scalar_lea.hbm %s470_s7, 16 }
 0x18d   :  { %p354_p5 = scmp.ne.s32.totalorder %s470_s7, %s353_s22  ;;  %p357_p6 = scmp.lt.u32.totalorder %s353_s22, %s470_s7 }
 0x18f   :  { %p359_p7 = pnand %p357_p6, %p354_p5 }
 0x191   :  { %362 = shalt.err (!%p359_p7)
}
 0x192   :  { %278 = dma.vmem_to_hbm [thread:$0]  %s276_s18, 16, %s470_s7, [#allocation4]  }
 0x193   :  { %363 = dma.done.wait [#allocation4], 16  }
 0x194   :  { %364 = vsyncadd [#allocation4], 4294967280 }
 0x195   :  { %282 = vsyncpa [#allocation4], 1 }

</bundles_post_ra>
